<compile_context>
chip_gen: v5e
topology: v5e:2x2
jax: 0.10.0
libtpu: 0.0.40
codegen_flags: <defaults>
</compile_context>

<pallas_src>
import jax
import jax.numpy as jnp
from jax.experimental import pallas as pl
from jax.experimental.pallas import tpu as pltpu


# ----------------------------------------------------------------------------
# pltpu.roll direction probe (one tiny pallas_call, cached).
# We rely on jnp.roll semantics (result[i] = x[i - shift]); this probe guards
# the depthwise shift direction against any backend convention difference.
# ----------------------------------------------------------------------------
_ROLL_MATCHES_JNP = None


def _roll_matches_jnp():
    global _ROLL_MATCHES_JNP
    if _ROLL_MATCHES_JNP is None:
        def k(x_ref, o_ref):
            o_ref[...] = pltpu.roll(x_ref[...], shift=1, axis=1)

        x = jnp.tile(jnp.arange(128, dtype=jnp.float32)[None, :], (8, 1))
        y = pl.pallas_call(
            k, out_shape=jax.ShapeDtypeStruct((8, 128), jnp.float32))(x)
        _ROLL_MATCHES_JNP = bool(y[0, 1] == 0.0)   # jnp.roll: y[1] = x[0] = 0
    return _ROLL_MATCHES_JNP


def _default_compute_dtype():
    """bf16 on v6e/v7x (fast bf16 MXU/VPU), f32 on v5e and older chips."""
    try:
        kind = jax.devices()[0].device_kind.lower()
    except Exception:
        return jnp.float32
    if any(tag in kind for tag in ("v6", "v7", "6e", "7x")):
        return jnp.bfloat16
    return jnp.float32


def _choose_batch_tile(N, HW, Cin, C, budget_bytes):
    """Images per grid step, bounded by a VMEM budget (v7x-safe)."""
    # Rough live f32 footprint per flattened-spatial element inside one step:
    # x/rx/x3 + double-buffered input (~5*Cin), fused/t2/t4/d2/d4/x4/x5/acc
    # chains/shifted temp + double-buffered output (~17*C), 24 mask rows.
    per_elem = 4 * (5 * Cin + 17 * C + 24)
    max_elems = max(HW, budget_bytes // per_elem)
    b = max(1, min(N, max_elems // HW))
    # v7x has 2 TensorCores: prefer >=2 grid steps when each step would still
    # have a wide lane extent (>= 16 f32 vregs of spatial work per row).
    half = -(-N // 2)
    if half * HW >= 2048 and half < b:
        b = half
    return b


# ----------------------------------------------------------------------------
# Pallas kernel: B images per grid step, channels-major (C, B*HW) layout.
# ----------------------------------------------------------------------------
def _make_block_kernel(H, W, HW, BHW, C, Cin, roll_sign, compute_dtype):
    cdt = compute_dtype

    def kernel(x_ref, w_in_ref, b_in_ref, dwk_ref, w23_ref, b23_ref,
               w4b_ref, b4b_ref, out_ref):
        x = x_ref[...]                                    # (Cin, BHW) f32
        relu = lambda v: jnp.maximum(v, 0.0)

        # --- boundary masks generated in-kernel (no (34, HW) input array). ---
        # One int iota row; per-tap masks are a couple of compares on a
        # (1, BHW) row, hoisted once.  They zero image-edge taps AND the
        # cross-image wrap introduced by folding the batch into the lane axis.
        pos = jax.lax.broadcasted_iota(jnp.int32, (1, BHW), 1)
        rem = pos % HW
        hh = rem // W
        ww = rem - hh * W
        masks = {}
        for di in range(-2, 3):
            for dj in range(-2, 3):
                conds = []
                if di > 0:
                    conds.append(hh < H - di)
                elif di < 0:
                    conds.append(hh >= -di)
                if dj > 0:
                    conds.append(ww < W - dj)
                elif dj < 0:
                    conds.append(ww >= -dj)
                if conds:
                    c = conds[0]
                    for e in conds[1:]:
                        c = c & e
                    masks[(di, dj)] = c.astype(cdt)
                else:
                    masks[(di, dj)] = None                # center tap: no mask

        dwk = dwk_ref[...].astype(cdt)                    # (C, 34) dw taps
        w_all = w_in_ref[...].astype(cdt)                 # (4C, Cin)
        b_all = b_in_ref[...]                             # (4C, 1) f32

        def pointwise(wt, v):
            # (Co, Ci) @ (Ci, BHW): 1x1 conv as an MXU matmul, f32 accumulate.
            return jnp.dot(wt, v, preferred_element_type=jnp.float32)

        def depthwise(t, k, off):
            # k x k depthwise conv ('same' padding, cross-correlation) on the
            # flattened lane axis: pltpu.roll (XLU) + boundary mask + MAC.
            # Two interleaved f32 accumulator chains (enough ILP to hide the
            # VPU add latency without 5 live (C, BHW) partials).
            p = k // 2
            acc = [None, None]
            sel = 0
            idx = off
            for i in range(k):
                di = i - p
                for j in range(k):
                    dj = j - p
                    s = di * W + dj
                    if s == 0:
                        shifted = t
                    else:
                        shifted = pltpu.roll(
                            t, shift=(roll_sign * s) % BHW, axis=1)
                    contrib = shifted * dwk[:, idx:idx + 1]   # per-channel tap
                    m = masks[(di, dj)]
                    if m is not None:
                        contrib = contrib * m
                    if acc[sel] is None:
                        acc[sel] = contrib.astype(jnp.float32)
                    else:
                        acc[sel] = acc[sel] + contrib          # f32 accumulate
                    sel = 1 - sel
                    idx += 1
            return acc[0] if acc[1] is None else acc[0] + acc[1]

        rx = relu(x).astype(cdt)

        # Fused op1 / op2-head / op4-head 1x1 convs: single (3C, Cin) matmul.
        fused = pointwise(w_all[0:3 * C], rx) + b_all[0:3 * C]   # (3C, BHW) f32

        x1 = fused[0:C]                          # op1 output (BN folded)
        t2 = relu(fused[C:2 * C]).astype(cdt)    # op2 after conv+BN+ReLU
        t4 = relu(fused[2 * C:3 * C]).astype(cdt)  # op4 after conv+BN+ReLU

        # op2 tail (3x3 dw -> 1x1 -> BN) folded with op3 (1x1 -> BN); residual.
        d2 = depthwise(t2, 3, 0)
        x3 = x + pointwise(w23_ref[...].astype(cdt),
                           d2.astype(cdt)) + b23_ref[...]       # (Cin, BHW)

        # op4 tail: 5x5 dw -> 1x1 -> BN.
        d4 = depthwise(t4, 5, 9)
        x4 = pointwise(w4b_ref[...].astype(cdt),
                       d4.astype(cdt)) + b4b_ref[...]           # (C, BHW)

        # op5 applied to x3 (1x1 dw scale + 1x1 pw + BN, all folded).
        x5 = pointwise(w_all[3 * C:4 * C],
                       relu(x3).astype(cdt)) + b_all[3 * C:4 * C]

        # Channel concat == contiguous 8-aligned sublane-slice stores on a
        # lane-dense block (no in-kernel concatenate along the lane axis).
        out_ref[0:C, :] = x1
        out_ref[C:2 * C, :] = x4
        out_ref[2 * C:3 * C, :] = x5

    return kernel


# ----------------------------------------------------------------------------
# Host-side parameter folding / packing (wrapper-time, free).
# ----------------------------------------------------------------------------
def fold_weights(weights):
    (dw1, pw1, s1, b1,
     w2a, b2a, s2a, t2a, dw2, pw2, s2b, t2b,
     pw3, s3, b3,
     w4a, b4a, s4a, t4a, dw4, pw4, s4b, t4b,
     dw5, pw5, s5, b5) = weights
    Cin, C = pw1.shape
    hi = jax.lax.Precision.HIGHEST

    # op1: relu(x) * dw1 -> pw1 -> BN   ==>  W1 @ relu(x) + b1
    W1 = (pw1 * dw1.reshape(Cin, 1) * s1).T               # (C, Cin)
    B1 = b1.reshape(C, 1)

    # op2 head: relu(x) -> conv(+bias) -> BN
    W2a = (w2a * s2a).T                                   # (C, Cin)
    B2a = (s2a * b2a + t2a).reshape(C, 1)

    # op4 head
    W4a = (w4a * s4a).T                                   # (C, Cin)
    B4a = (s4a * b4a + t4a).reshape(C, 1)

    # op5: relu(x3) * dw5 -> pw5 -> BN
    W5 = (pw5 * dw5.reshape(Cin, 1) * s5).T               # (C, Cin)
    B5 = b5.reshape(C, 1)

    W_in = jnp.concatenate([W1, W2a, W4a, W5], axis=0)    # (4C, Cin)
    B_in = jnp.concatenate([B1, B2a, B4a, B5], axis=0)    # (4C, 1)

    # op2 tail (pw2 + BN) folded with op3 (pw3 + BN):
    #   x3 = x + W23 @ depthwise3x3(t2) + b23
    W23 = (jnp.dot(pw2 * s2b, pw3, precision=hi) * s3).T  # (Cin, C)
    b23 = (s3 * jnp.dot(t2b, pw3, precision=hi) + b3).reshape(Cin, 1)

    # op4 tail (pw4 + BN):
    W4b = (pw4 * s4b).T                                    # (C, C)
    b4b = t4b.reshape(C, 1)

    # Depthwise taps packed per-channel: columns [0:9] = 3x3, [9:34] = 5x5.
    d2 = jnp.transpose(dw2.reshape(9, C))                  # (C, 9)
    d4 = jnp.transpose(dw4.reshape(25, C))                 # (C, 25)
    dwk = jnp.concatenate([d2, d4], axis=1)                # (C, 34)

    return W_in, B_in, dwk, W23, b23, W4b, b4b


# ----------------------------------------------------------------------------
# Wrapper
# ----------------------------------------------------------------------------
def block_forward(x_nchw, weights, compute_dtype=None,
                  vmem_budget_bytes=40 << 20):
    """x_nchw: (N, Cin, H, W) float32.  Returns (N, 3*C, H, W) float32."""
    N, Cin, H, W = x_nchw.shape
    C = weights[1].shape[1]               # pw1: (Cin, C)
    HW = H * W

    if compute_dtype is None:
        compute_dtype = _default_compute_dtype()

    w_in, b_in, dwk, w23, b23, w4b, b4b = fold_weights(weights)
    params = (w_in, b_in, dwk, w23, b23, w4b, b4b)

    # Fold B images per grid step into the lane axis: (Cin, B*HW).
    B = _choose_batch_tile(N, HW, Cin, C, vmem_budget_bytes)
    n_tiles = -(-N // B)
    N_pad = n_tiles * B
    BHW = B * HW

    x = x_nchw.reshape(N, Cin, HW)
    if N_pad != N:
        x = jnp.pad(x, ((0, N_pad - N), (0, 0), (0, 0)))
    # Channels-major, batch-then-spatial on the lane axis.
    x = jnp.transpose(x, (1, 0, 2)).reshape(Cin, N_pad * HW)

    roll_sign = -1 if _roll_matches_jnp() else 1
    kernel = _make_block_kernel(H, W, HW, BHW, C, Cin, roll_sign,
                                compute_dtype)

    def rep_spec(a):
        nd = a.ndim
        return pl.BlockSpec(a.shape, lambda n, _nd=nd: (0,) * _nd)

    in_specs = ([pl.BlockSpec((Cin, BHW), lambda n: (0, n))]
                + [rep_spec(p) for p in params])
    out_spec = pl.BlockSpec((3 * C, BHW), lambda n: (0, n))

    out = pl.pallas_call(
        kernel,
        out_shape=jax.ShapeDtypeStruct((3 * C, N_pad * HW), jnp.float32),
        grid=(n_tiles,),
        in_specs=in_specs,
        out_specs=out_spec,
        compiler_params=pltpu.CompilerParams(
            dimension_semantics=("parallel",),
            # Capped under v7x's 64 MiB physical VMEM; harmless headroom on
            # v5e/v6e (128 MiB).  The batch tile above keeps usage well below.
            vmem_limit_bytes=48 * 1024 * 1024),
    )(x, *params)

    out = out.reshape(3 * C, N_pad, HW)[:, :N, :]
    out = jnp.transpose(out, (1, 0, 2)).reshape(N, 3 * C, H, W)
    return out


# ----------------------------------------------------------------------------
# Deterministic parameter construction (synthetic, in_channel != channel case)
# ----------------------------------------------------------------------------
def init_params(key, cin, c):
    keys = iter(jax.random.split(key, 64))
    nxt = lambda: next(keys)

    def w(shape, scale=0.2):
        return scale * jax.random.normal(nxt(), shape, jnp.float32)

    def bn(ch):
        gamma = 1.0 + 0.1 * jax.random.normal(nxt(), (ch,), jnp.float32)
        beta = 0.1 * jax.random.normal(nxt(), (ch,), jnp.float32)
        mean = 0.1 * jax.random.normal(nxt(), (ch,), jnp.float32)
        var = 1.0 + 0.1 * jnp.abs(jax.random.normal(nxt(), (ch,), jnp.float32))
        scale = gamma * jax.lax.rsqrt(var + 1e-5)
        shift = beta - mean * scale
        return scale.reshape(1, ch), shift.reshape(1, ch)

    dw1 = w((1, cin))                 # Conv2d(cin, cin, 1, groups=cin)
    pw1 = w((cin, c))                 # Conv2d(cin, c, 1, bias=False)
    s1, b1 = bn(c)

    w2a = w((cin, c)); b2a = w((1, c), 0.1)   # Conv2d(cin, c, 1) with bias
    s2a, t2a = bn(c)
    dw2 = w((3, 3, c))                # Conv2d(c, c, 3, padding=1, groups=c)
    pw2 = w((c, c))
    s2b, t2b = bn(c)

    pw3 = w((c, cin))                 # Conv2d(c, cin, 1, bias=False)
    s3, b3 = bn(cin)

    w4a = w((cin, c)); b4a = w((1, c), 0.1)   # Conv2d(cin, c, 1) with bias
    s4a, t4a = bn(c)
    dw4 = w((5, 5, c))                # Conv2d(c, c, 5, padding=2, groups=c)
    pw4 = w((c, c))
    s4b, t4b = bn(c)

    dw5 = w((1, cin))                 # Conv2d(cin, cin, 1, groups=cin)
    pw5 = w((cin, c))
    s5, b5 = bn(c)

    return (dw1, pw1, s1, b1,
            w2a, b2a, s2a, t2a, dw2, pw2, s2b, t2b,
            pw3, s3, b3,
            w4a, b4a, s4a, t4a, dw4, pw4, s4b, t4b,
            dw5, pw5, s5, b5)


# ----------------------------------------------------------------------------
# Pure-JAX reference (original, unfolded module math, NHWC internally).
# ----------------------------------------------------------------------------
def block_reference(x_nchw, weights):
    (dw1, pw1, s1, b1,
     w2a, b2a, s2a, t2a, dw2, pw2, s2b, t2b,
     pw3, s3, b3,
     w4a, b4a, s4a, t4a, dw4, pw4, s4b, t4b,
     dw5, pw5, s5, b5) = weights

    x = jnp.transpose(x_nchw, (0, 2, 3, 1))
    relu = lambda v: jnp.maximum(v, 0.0)
    hi = jax.lax.Precision.HIGHEST
    pw = lambda v, w: jnp.einsum('nhwc,cd->nhwd', v, w, precision=hi)

    def dwc(v, w, k):
        p = k // 2
        H, W = v.shape[1], v.shape[2]
        vp = jnp.pad(v, ((0, 0), (p, p), (p, p), (0, 0)))
        acc = jnp.zeros_like(v)
        for i in range(k):
            for j in range(k):
                acc = acc + vp[:, i:i + H, j:j + W, :] * w[i, j, :]
        return acc

    x1 = pw(relu(x) * dw1, pw1) * s1 + b1

    t = pw(relu(x), w2a) + b2a
    t = relu(t * s2a + t2a)
    x2 = pw(dwc(t, dw2, 3), pw2) * s2b + t2b

    x3 = x + (pw(x2, pw3) * s3 + b3)

    t = pw(relu(x), w4a) + b4a
    t = relu(t * s4a + t4a)
    x4 = pw(dwc(t, dw4, 5), pw4) * s4b + t4b

    x5 = pw(relu(x3) * dw5, pw5) * s5 + b5

    out = jnp.concatenate([x1, x4, x5], axis=-1)
    return jnp.transpose(out, (0, 3, 1, 2))


if __name__ == "__main__":
    key = jax.random.PRNGKey(0)
    N, Cin, C, H, W = 2, 4, 8, 16, 16     # in_channel != channel branch
    kx, kp = jax.random.split(key)
    x = jax.random.normal(kx, (N, Cin, H, W), jnp.float32)
    weights = init_params(kp, Cin, C)

    ref = block_reference(x, weights)

    # Explicit f32 compute path (strict check).  Tolerance covers folded
    # parameter reordering and the MXU's default-precision f32 matmul passes.
    out = jax.block_until_ready(
        block_forward(x, weights, compute_dtype=jnp.float32))
    assert out.shape == (N, 3 * C, H, W), out.shape
    assert jnp.allclose(out, ref, atol=1e-2, rtol=1e-2), (
        float(jnp.max(jnp.abs(out - ref))))

    # Auto path (bf16 MXU/VPU on v6e/v7x, f32 elsewhere); loose sanity check.
    out_auto = jax.block_until_ready(block_forward(x, weights))
    assert out_auto.shape == (N, 3 * C, H, W), out_auto.shape
    assert jnp.allclose(out_auto, ref, atol=6e-2, rtol=6e-2), (
        float(jnp.max(jnp.abs(out_auto - ref))))

    print("KERNEL_OK")
</pallas_src>

<mosaic_0001>
module attributes {stable_mosaic.version = 11 : i64} {
  func.func @k(%arg0: memref<8x128xf32, #tpu.memory_space<vmem>>, %arg1: memref<8x128xf32, #tpu.memory_space<vmem>>) attributes {dimension_semantics = [], scalar_prefetch = 0 : i64, scratch_operands = 0 : i64, tpu.core_type = #tpu.core_type<tc>} {
    %c0 = arith.constant 0 : index
    %c0_0 = arith.constant 0 : index
    %0 = vector.load %arg0[%c0, %c0_0] : memref<8x128xf32, #tpu.memory_space<vmem>>, vector<8x128xf32>
    %c1_i32 = arith.constant 1 : i32
    %1 = tpu.dynamic_rotate %0 by %c1_i32 dim 1 : vector<8x128xf32>, i32 -> vector<8x128xf32>
    %c0_1 = arith.constant 0 : index
    %c0_2 = arith.constant 0 : index
    %2 = vector.load %arg1[%c0_1, %c0_2] : memref<8x128xf32, #tpu.memory_space<vmem>>, vector<8x128xf32>
    tpu.vector_store %arg1[%c0_1, %c0_2], %1 {strides = array<i32>} : memref<8x128xf32, #tpu.memory_space<vmem>>, vector<8x128xf32>,
    return
  }
}

</mosaic_0001>

<bundles_post_ra>
// kernel: tpu_custom_call.1
= control target key start
LH: loop header
LB: loop body
LE: loop exit
PB: predicated region body
PF: predicated region fallthrough
CT: control target
= control target key end

     0   :  { %6 = vsyncpa [#allocation3], 0  ;;  %s118_s0 = inlined_call_operand.hbm [shape: f32[8,128], index: 0, kind: input, shape index: {}]   ;;  %s119_s1 = inlined_call_operand.hbm [shape: f32[8,128], index: 1, kind: output, shape index: {}]  }
   0x1   :  { %7 = vsyncpa [#allocation4], 0  ;;  %s13_s8 = sshll.u32 %s118_s0, 4  ;;  %s99_s9 = smov [#allocation2]   ;;  %s14_s8 = int_to_ptr.hbm [resolvable:$true] %s13_s8 }
   0x2   :  { %s15_s10 = sshll.u32 %s99_s9, 4  ;;  %s16_s10 = int_to_ptr.vmem [resolvable:$true] %s15_s10 }
   0x3   :  { %18 = dma.hbm_to_vmem [thread:$0]  %s14_s8, 128, %s16_s10, [#allocation3]  }
   0x4   :  { %95 = dma.done.wait [#allocation3], 128  }
   0x5   :  { %96 = vsyncadd [#allocation3], 4294967168  ;;  %v23_v0 = vld [vmem:[#allocation2] sm:$0xff]  ;;  %s100_s11 = smov 1   ;;  %s101_s12 = smov [#allocation5]  }
   0x6   :  { %24 = vrot.lane.b32.xlu0 %v23_v0, %s100_s11  ;;  %s32_s13 = sshll.u32 %s101_s12, 4  ;;  %s34_s16 = sshll.u32 %s119_s1, 4  ;;  %s33_s13 = int_to_ptr.vmem [resolvable:$true] %s32_s13  ;;  %s35_s16 = int_to_ptr.hbm [resolvable:$true] %s34_s16 }
  0x78   :  { %v25_v1 = vpop.permute.xlu0 %24 }
  0x79   :  { %26 = vst [vmem:[#allocation5] sm:$0xff] %v25_v1 }
  0x7a   :  { %37 = dma.vmem_to_hbm [thread:$0]  %s33_s13, 128, %s35_s16, [#allocation4]  }
  0x7b   :  { %97 = dma.done.wait [#allocation4], 128  }
  0x7c   :  { %98 = vsyncadd [#allocation4], 4294967168 }
  0x7d   :  { %42 = vsyncpa [#allocation3], 1 }
  0x7e   :  { %43 = vsyncpa [#allocation4], 1 }

</bundles_post_ra>
